<compile_context>
chip_gen: v7x
topology: tpu7x:2x2x1
jax: 0.10.0
libtpu: 0.0.40
codegen_flags: <defaults>
</compile_context>

<pallas_src>
import numpy as np
import jax
import jax.numpy as jnp
from jax import lax
from jax.experimental import pallas as pl
from jax.experimental.pallas import tpu as pltpu


_VMEM_LIMIT = 32 * 1024 * 1024  # safe on v5e(128M)/v6e(128M)/v7x(64M physical)


def _pick_tile(n, candidates):
    """First-preference tile from `candidates` that divides n, else n."""
    for t in candidates:
        if t <= n and n % t == 0:
            return t
    return n


def maxpool2x2(x):
    # x: (B, C, H, W) -> (B, C, H//2, W//2)   (nn.MaxPool2d(2, stride=2))
    B, C, H, W = x.shape
    return x.reshape(B, C, H // 2, 2, W // 2, 2).max(axis=(3, 5))


# ----------------------------------------------------------------------------
# Kernel 1: stem 1x1 conv (recomputed in f32) + fused phi / g 1x1 projections,
# tiled over (B, N/TN).  Weights stay resident; x tile never leaves VMEM.
# ----------------------------------------------------------------------------
def _proj_kernel(img_ref, ws_ref, wp_ref, wg_ref, ph_ref, g_ref):
    # stem: (C, Cp) f32 @ (Cp, TN) f32 -> (C, TN) f32   (Cp = padded in-chans)
    x = jnp.dot(ws_ref[...], img_ref[0], preferred_element_type=jnp.float32)
    xb = x.astype(jnp.bfloat16)
    ph_ref[0] = jnp.dot(wp_ref[...], xb,
                        preferred_element_type=jnp.float32).astype(ph_ref.dtype)
    g_ref[0] = jnp.dot(wg_ref[...], xb,
                       preferred_element_type=jnp.float32).astype(g_ref.dtype)


def project_phi_g(img_flat, w_stem, sa, tn):
    # img_flat: (B, Cp, N) f32 -> phi (B,C8,N), g (B,C2,N)  [bf16]
    B, Cp, N = img_flat.shape
    C = w_stem.shape[0]
    C8, C2 = C // 8, C // 2
    wp = sa["w_phi"].astype(jnp.bfloat16)
    wg = sa["w_g"].astype(jnp.bfloat16)
    return pl.pallas_call(
        _proj_kernel,
        out_shape=(
            jax.ShapeDtypeStruct((B, C8, N), jnp.bfloat16),
            jax.ShapeDtypeStruct((B, C2, N), jnp.bfloat16),
        ),
        grid_spec=pltpu.PrefetchScalarGridSpec(
            num_scalar_prefetch=0,
            grid=(B, N // tn),
            in_specs=[
                pl.BlockSpec((1, Cp, tn), lambda b, n: (b, 0, n)),
                pl.BlockSpec((C, Cp), lambda b, n: (0, 0)),
                pl.BlockSpec((C8, C), lambda b, n: (0, 0)),
                pl.BlockSpec((C2, C), lambda b, n: (0, 0)),
            ],
            out_specs=[
                pl.BlockSpec((1, C8, tn), lambda b, n: (b, 0, n)),
                pl.BlockSpec((1, C2, tn), lambda b, n: (b, 0, n)),
            ],
        ),
        compiler_params=pltpu.CompilerParams(
            dimension_semantics=("parallel", "parallel"),
            vmem_limit_bytes=_VMEM_LIMIT,
        ),
    )(img_flat, w_stem, wp, wg)


# ----------------------------------------------------------------------------
# Kernel 2: self-attention core + fused discriminator head, tiled over
# query rows: grid = (B, N/TQ).  Per tile:
#   x      = w_stem @ img_tile                (f32, recomputed — no HBM x)
#   theta  = w_theta @ x                      (bf16, fused — no HBM theta)
#   logits = theta^T @ phi_p  -> softmax -> record (bf16)
#   attn_g = g_p @ attn^T ; o = W_attn @ attn_g ; out = x + sigma*o
#   head:  pred += w_fc . sum_spatial(relu(out))   (accumulated across tiles)
# ----------------------------------------------------------------------------
def _attn_head_kernel(img_ref, ws_ref, wth_ref, ph_ref, g_ref, wo_ref, wfc_ref,
                      sig_ref, bfc_ref, attn_ref, pred_ref):
    q = pl.program_id(1)

    # stem recompute (f32, exact) and theta projection (bf16 MXU)
    x = jnp.dot(ws_ref[...], img_ref[0],
                preferred_element_type=jnp.float32)           # (C, TQ) f32
    xb = x.astype(jnp.bfloat16)
    theta = jnp.dot(wth_ref[...], xb,
                    preferred_element_type=jnp.float32).astype(jnp.bfloat16)

    phi = ph_ref[0]                                           # (C8, Nd) bf16
    # logits: theta^T @ phi -> (TQ, Nd), f32 accumulation on the MXU
    logits = lax.dot_general(theta, phi, (((0,), (0,)), ((), ())),
                             preferred_element_type=jnp.float32)
    logits = logits - jnp.max(logits, axis=-1, keepdims=True)
    e = jnp.exp(logits)
    # EUP-slot reciprocal instead of a wide divide
    attn = e * pl.reciprocal(jnp.sum(e, axis=-1, keepdims=True), approx=True)
    attn_b = attn.astype(jnp.bfloat16)
    attn_ref[0] = attn_b                                      # recording output

    g = g_ref[0]                                              # (C2, Nd) bf16
    # attn_g = g @ attn^T -> (C2, TQ)
    attn_g = lax.dot_general(g, attn_b, (((1,), (1,)), ((), ())),
                             preferred_element_type=jnp.float32)
    # output 1x1 conv: (C, C2) @ (C2, TQ) -> (C, TQ)
    o = jnp.dot(wo_ref[...], attn_g.astype(jnp.bfloat16),
                preferred_element_type=jnp.float32)
    out = x + sig_ref[0, 0] * o                               # residual (f32)

    # fused head: ReLU -> spatial sum -> dot with w_fc, accumulated over tiles
    feat = jnp.sum(jnp.maximum(out, 0.0), axis=-1, keepdims=True)    # (C, 1)
    partial = jnp.sum(feat * wfc_ref[...])                            # scalar

    @pl.when(q == 0)
    def _init():
        pred_ref[...] = jnp.zeros_like(pred_ref) + bfc_ref[0, 0]

    pred_ref[...] += partial


def self_attn_and_head(img_flat, w_stem, phi_p, g_p, params, tq):
    # Returns (pred (B,1) f32, attn (B, N, N//4) bf16)
    sa = params["sa"]
    B, Cp, N = img_flat.shape
    C = w_stem.shape[0]
    C8, C2 = C // 8, C // 2
    Nd = N // 4

    attn, pred = pl.pallas_call(
        _attn_head_kernel,
        out_shape=(
            jax.ShapeDtypeStruct((B, N, Nd), jnp.bfloat16),   # recorded softmax
            jax.ShapeDtypeStruct((B, 1, 1), jnp.float32),     # discriminator pred
        ),
        grid_spec=pltpu.PrefetchScalarGridSpec(
            num_scalar_prefetch=0,
            grid=(B, N // tq),
            in_specs=[
                pl.BlockSpec((1, Cp, tq), lambda b, q: (b, 0, q)),   # img tile
                pl.BlockSpec((C, Cp), lambda b, q: (0, 0)),          # w_stem
                pl.BlockSpec((C8, C), lambda b, q: (0, 0)),          # w_theta
                pl.BlockSpec((1, C8, Nd), lambda b, q: (b, 0, 0)),   # phi_p (resident)
                pl.BlockSpec((1, C2, Nd), lambda b, q: (b, 0, 0)),   # g_p   (resident)
                pl.BlockSpec((C, C2), lambda b, q: (0, 0)),          # w_attn
                pl.BlockSpec((C, 1), lambda b, q: (0, 0)),           # w_fc
                pl.BlockSpec(memory_space=pltpu.MemorySpace.SMEM),   # sigma (1,1)
                pl.BlockSpec(memory_space=pltpu.MemorySpace.SMEM),   # b_fc  (1,1)
            ],
            out_specs=[
                pl.BlockSpec((1, tq, Nd), lambda b, q: (b, q, 0)),
                pl.BlockSpec((1, 1, 1), lambda b, q: (b, 0, 0)),     # accumulator
            ],
        ),
        compiler_params=pltpu.CompilerParams(
            dimension_semantics=("parallel", "arbitrary"),
            vmem_limit_bytes=_VMEM_LIMIT,
        ),
    )(img_flat, w_stem,
      sa["w_theta"].astype(jnp.bfloat16), phi_p, g_p,
      sa["w_attn"].astype(jnp.bfloat16), params["w_fc"],
      sa["sigma"], params["b_fc"])

    return pred.reshape(B, 1), attn


# ----------------------------------------------------------------------------
# Synthetic BigGAN-style discriminator containing one Self_Attn module
# (spectral_norm=False, so every 1x1 conv is a plain bias-free matmul):
#   stem 1x1 conv -> Self_Attn -> ReLU -> global sum pool -> linear.
# ----------------------------------------------------------------------------
def discriminator_forward(params, img, labels=None):
    # labels unused in this synthetic discriminator (kept for API parity)
    B, Cin, H, W = img.shape
    N = H * W
    C = params["w_stem"].shape[0]
    C8, C2 = C // 8, C // 2

    # pad the tiny input-channel axis to 8 (zero weight/zero img -> exact)
    pad = (-Cin) % 8
    img_flat = img.reshape(B, Cin, N)
    w_stem = params["w_stem"]
    if pad:
        img_flat = jnp.pad(img_flat, ((0, 0), (0, pad), (0, 0)))
        w_stem = jnp.pad(w_stem, ((0, 0), (0, pad)))

    tn = _pick_tile(N, (2048, 1024, 512, 256, 128))
    phi, g = project_phi_g(img_flat, w_stem, params["sa"], tn)

    # TODO(synk): fuse this 2x2 max-pool into the projection kernel epilogue
    # (needs TN % (2*W) == 0 and a lane-friendly even/odd reduce) to remove
    # the phi/g HBM round-trip as well.
    phi_p = maxpool2x2(phi.reshape(B, C8, H, W)).reshape(B, C8, N // 4)
    g_p = maxpool2x2(g.reshape(B, C2, H, W)).reshape(B, C2, N // 4)

    tq = _pick_tile(N, (512, 256, 128))
    pred, attn = self_attn_and_head(img_flat, w_stem, phi_p, g_p, params, tq)
    return pred, attn


class RecorderBigGANPallas:
    """Mirrors RecorderBigGAN.forward: runs the discriminator, records the
    Self_Attn softmax output(s), returns (pred, stacked attentions)."""

    def __init__(self, params):
        self.params = params
        self.recordings = []
        self.ejected = False

    def clear(self):
        self.recordings.clear()

    def eject(self):
        self.ejected = True
        return self.params

    def __call__(self, img, labels=None):
        assert not self.ejected, "recorder has been ejected, cannot be used anymore"
        self.clear()
        pred, attn = discriminator_forward(self.params, img, labels)
        self.recordings.append(attn)                 # "hook" on softmax output
        attns = jnp.stack(self.recordings, axis=0)   # (num_Self_Attn, B, N, N//4)
        return pred, attns


# ----------------------------------------------------------------------------
# Pure-JAX f32 reference for verification
# ----------------------------------------------------------------------------
def reference_forward(params, img):
    B, Cin, H, W = img.shape
    N = H * W
    sa = params["sa"]
    x = jnp.einsum("oc,bcn->bon", params["w_stem"], img.reshape(B, Cin, N))
    C = x.shape[1]
    theta = jnp.einsum("oc,bcn->bon", sa["w_theta"], x)
    phi = jnp.einsum("oc,bcn->bon", sa["w_phi"], x).reshape(B, C // 8, H, W)
    g = jnp.einsum("oc,bcn->bon", sa["w_g"], x).reshape(B, C // 2, H, W)
    phi_p = maxpool2x2(phi).reshape(B, C // 8, N // 4)
    g_p = maxpool2x2(g).reshape(B, C // 2, N // 4)
    attn = jax.nn.softmax(jnp.einsum("bcn,bcm->bnm", theta, phi_p), axis=-1)
    attn_g = jnp.einsum("bcm,bnm->bcn", g_p, attn)
    o = jnp.einsum("oc,bcn->bon", sa["w_attn"], attn_g)
    out = x + sa["sigma"][0, 0] * o
    feat = jnp.sum(jnp.maximum(out, 0.0), axis=-1)
    pred = feat @ params["w_fc"] + params["b_fc"][0, 0]
    return pred, attn[None]


if __name__ == "__main__":
    key = jax.random.PRNGKey(0)
    B, Cin, H, W = 2, 3, 32, 32
    C = 64                      # Self_Attn in_channels (divisible by 8)
    ks = jax.random.split(key, 8)

    img = jax.random.normal(ks[0], (B, Cin, H, W), jnp.float32)
    params = {
        "w_stem": jax.random.normal(ks[1], (C, Cin), jnp.float32) * 0.2,
        "sa": {
            "w_theta": jax.random.normal(ks[2], (C // 8, C), jnp.float32) * 0.1,
            "w_phi":   jax.random.normal(ks[3], (C // 8, C), jnp.float32) * 0.1,
            "w_g":     jax.random.normal(ks[4], (C // 2, C), jnp.float32) * 0.1,
            "w_attn":  jax.random.normal(ks[5], (C, C // 2), jnp.float32) * 0.1,
            # torch initializes sigma=0; use nonzero so the attention branch
            # actually contributes (deterministic, in-script).
            "sigma": jnp.full((1, 1), 0.5, jnp.float32),
        },
        "w_fc": jax.random.normal(ks[6], (C, 1), jnp.float32) * 0.1,
        "b_fc": jnp.zeros((1, 1), jnp.float32),
    }

    recorder = RecorderBigGANPallas(params)
    pred, attns = recorder(img)
    jax.block_until_ready((pred, attns))

    ref_pred, ref_attns = reference_forward(params, img)
    # bf16 MXU operands + bf16 recorded attention map -> relaxed tolerances.
    np.testing.assert_allclose(np.asarray(pred), np.asarray(ref_pred),
                               rtol=5e-2, atol=5e-2)
    np.testing.assert_allclose(np.asarray(attns.astype(jnp.float32)),
                               np.asarray(ref_attns), rtol=5e-2, atol=1e-3)
    assert attns.shape == (1, B, H * W, H * W // 4)
    print("KERNEL_OK")
</pallas_src>

<mosaic_0001>
module attributes {stable_mosaic.version = 11 : i64} {
  func.func @_proj_kernel(%arg0: i32, %arg1: i32, %arg2: memref<1x8x1024xf32, #tpu.memory_space<vmem>>, %arg3: memref<64x8xf32, #tpu.memory_space<vmem>>, %arg4: memref<8x64xbf16, #tpu.memory_space<vmem>>, %arg5: memref<32x64xbf16, #tpu.memory_space<vmem>>, %arg6: memref<1x8x1024xbf16, #tpu.memory_space<vmem>>, %arg7: memref<1x32x1024xbf16, #tpu.memory_space<vmem>>) attributes {dimension_semantics = [#tpu.dimension_semantics<parallel>, #tpu.dimension_semantics<parallel>], iteration_bounds = array<i64: 2, 1>, scalar_prefetch = 0 : i64, scratch_operands = 0 : i64, tpu.core_type = #tpu.core_type<tc>, window_params = [{transform_indices = @transform_0, window_bounds = array<i64: 1, 8, 1024>}, {pipeline_mode = #tpu.pipeline_mode<synchronous>, transform_indices = @transform_1, window_bounds = array<i64: 64, 8>}, {pipeline_mode = #tpu.pipeline_mode<synchronous>, transform_indices = @transform_2, window_bounds = array<i64: 8, 64>}, {pipeline_mode = #tpu.pipeline_mode<synchronous>, transform_indices = @transform_3, window_bounds = array<i64: 32, 64>}, {transform_indices = @transform_4, window_bounds = array<i64: 1, 8, 1024>}, {transform_indices = @transform_5, window_bounds = array<i64: 1, 32, 1024>}]} {
    %c0 = arith.constant 0 : index
    %c0_0 = arith.constant 0 : index
    %0 = vector.load %arg3[%c0, %c0_0] : memref<64x8xf32, #tpu.memory_space<vmem>>, vector<64x8xf32>
    %c0_1 = arith.constant 0 : index
    %c0_2 = arith.constant 0 : index
    %c0_3 = arith.constant 0 : index
    %1 = vector.load %arg2[%c0_1, %c0_2, %c0_3] : memref<1x8x1024xf32, #tpu.memory_space<vmem>>, vector<1x8x1024xf32>
    %2 = vector.shape_cast %1 : vector<1x8x1024xf32> to vector<8x1024xf32>
    %cst = arith.constant dense<0.000000e+00> : vector<64x1024xf32>
    %3 = tpu.matmul %0, %2, %cst {dimension_numbers = #tpu.dot_dimension_numbers<[1], [0], [0], [1], [0, 0, 1, 1], [], []>} : vector<64x8xf32>, vector<8x1024xf32>, vector<64x1024xf32> -> vector<64x1024xf32>
    %4 = arith.truncf %3 : vector<64x1024xf32> to vector<64x1024xbf16>
    %c0_4 = arith.constant 0 : index
    %c0_5 = arith.constant 0 : index
    %5 = vector.load %arg4[%c0_4, %c0_5] : memref<8x64xbf16, #tpu.memory_space<vmem>>, vector<8x64xbf16>
    %cst_6 = arith.constant dense<0.000000e+00> : vector<8x1024xf32>
    %6 = tpu.matmul %5, %4, %cst_6 {dimension_numbers = #tpu.dot_dimension_numbers<[1], [0], [0], [1], [0, 0, 1, 1], [], []>} : vector<8x64xbf16>, vector<64x1024xbf16>, vector<8x1024xf32> -> vector<8x1024xf32>
    %7 = arith.truncf %6 : vector<8x1024xf32> to vector<8x1024xbf16>
    %c0_7 = arith.constant 0 : index
    %c0_8 = arith.constant 0 : index
    %c0_9 = arith.constant 0 : index
    %8 = vector.load %arg6[%c0_7, %c0_8, %c0_9] : memref<1x8x1024xbf16, #tpu.memory_space<vmem>>, vector<1x8x1024xbf16>
    %9 = vector.shape_cast %8 : vector<1x8x1024xbf16> to vector<8x1024xbf16>
    %10 = vector.shape_cast %7 : vector<8x1024xbf16> to vector<1x8x1024xbf16>
    tpu.vector_store %arg6[%c0_7, %c0_8, %c0_9], %10 {strides = array<i32>} : memref<1x8x1024xbf16, #tpu.memory_space<vmem>>, vector<1x8x1024xbf16>,
    %c0_10 = arith.constant 0 : index
    %c0_11 = arith.constant 0 : index
    %11 = vector.load %arg5[%c0_10, %c0_11] : memref<32x64xbf16, #tpu.memory_space<vmem>>, vector<32x64xbf16>
    %cst_12 = arith.constant dense<0.000000e+00> : vector<32x1024xf32>
    %12 = tpu.matmul %11, %4, %cst_12 {dimension_numbers = #tpu.dot_dimension_numbers<[1], [0], [0], [1], [0, 0, 1, 1], [], []>} : vector<32x64xbf16>, vector<64x1024xbf16>, vector<32x1024xf32> -> vector<32x1024xf32>
    %13 = arith.truncf %12 : vector<32x1024xf32> to vector<32x1024xbf16>
    %c0_13 = arith.constant 0 : index
    %c0_14 = arith.constant 0 : index
    %c0_15 = arith.constant 0 : index
    %14 = vector.load %arg7[%c0_13, %c0_14, %c0_15] : memref<1x32x1024xbf16, #tpu.memory_space<vmem>>, vector<1x32x1024xbf16>
    %15 = vector.shape_cast %14 : vector<1x32x1024xbf16> to vector<32x1024xbf16>
    %16 = vector.shape_cast %13 : vector<32x1024xbf16> to vector<1x32x1024xbf16>
    tpu.vector_store %arg7[%c0_13, %c0_14, %c0_15], %16 {strides = array<i32>} : memref<1x32x1024xbf16, #tpu.memory_space<vmem>>, vector<1x32x1024xbf16>,
    return
  }
  func.func @transform_0(%arg0: i32, %arg1: i32) -> (i32, i32, i32) {
    %c0_i32 = arith.constant 0 : i32
    %c0_i32_0 = arith.constant 0 : i32
    return %arg0, %c0_i32, %arg1 : i32, i32, i32
  }
  func.func @transform_1(%arg0: i32, %arg1: i32) -> (i32, i32) {
    %c0_i32 = arith.constant 0 : i32
    %c0_i32_0 = arith.constant 0 : i32
    %c0_i32_1 = arith.constant 0 : i32
    return %c0_i32, %c0_i32_0 : i32, i32
  }
  func.func @transform_2(%arg0: i32, %arg1: i32) -> (i32, i32) {
    %c0_i32 = arith.constant 0 : i32
    %c0_i32_0 = arith.constant 0 : i32
    %c0_i32_1 = arith.constant 0 : i32
    return %c0_i32, %c0_i32_0 : i32, i32
  }
  func.func @transform_3(%arg0: i32, %arg1: i32) -> (i32, i32) {
    %c0_i32 = arith.constant 0 : i32
    %c0_i32_0 = arith.constant 0 : i32
    %c0_i32_1 = arith.constant 0 : i32
    return %c0_i32, %c0_i32_0 : i32, i32
  }
  func.func @transform_4(%arg0: i32, %arg1: i32) -> (i32, i32, i32) {
    %c0_i32 = arith.constant 0 : i32
    %c0_i32_0 = arith.constant 0 : i32
    return %arg0, %c0_i32, %arg1 : i32, i32, i32
  }
  func.func @transform_5(%arg0: i32, %arg1: i32) -> (i32, i32, i32) {
    %c0_i32 = arith.constant 0 : i32
    %c0_i32_0 = arith.constant 0 : i32
    return %arg0, %c0_i32, %arg1 : i32, i32, i32
  }
}

</mosaic_0001>

<bundles_post_ra>
// kernel: tpu_custom_call.1
= control target key start
LH: loop header
LB: loop body
LE: loop exit
PB: predicated region body
PF: predicated region fallthrough
CT: control target
= control target key end

     0   :  { %11 = vsyncpa [#allocation3], 0  ;;  %s2329_s0 = inlined_call_operand.hbm [shape: f32[2,8,1024], index: 0, kind: input, shape index: {}]   ;;  %s2330_s1 = inlined_call_operand.vmem [shape: f32[64,8], index: 1, kind: input, shape index: {}]   ;;  %s2331_s2 = inlined_call_operand.vmem [shape: bf16[8,64], index: 2, kind: input, shape index: {}]   ;;  %s2332_s3 = inlined_call_operand.vmem [shape: bf16[32,64], index: 3, kind: input, shape index: {}]   ;;  %s2333_s4 = inlined_call_operand.hbm [shape: bf16[2,8,1024], index: 4, kind: output, shape index: {0}]   ;;  %s2334_s5 = inlined_call_operand.hbm [shape: bf16[2,32,1024], index: 5, kind: output, shape index: {1}]  }
   0x1   :  { %13 = vsyncpa [#allocation3 + $0x1], 0 }
   0x2   :  { %14 = vsyncpa [#allocation4], 0 }
   0x3   :  { %16 = vsyncpa [#allocation4 + $0x1], 0 }
   0x4   :  { %17 = vsyncpa [#allocation7], 0 }
   0x5   :  { %19 = vsyncpa [#allocation7 + $0x1], 0  ;;  %s1873_s18 = smov 0   ;;  %s1875_s19 = smov 0  }
   0x6   :  { %s1877_s20 = smov 0   ;;  %s1879_s21 = smov 0  }
   0x7   :  { %s1881_s22 = smov 0   ;;  %s1883_s23 = smov 0  }
   0x8 LB: > { %s1509_s24 = sadd.s32 4294967295, %s1834_s23   ;;  %s1510_s25 = sadd.s32 4294967294, %s1834_s23   ;;  %s1834_s23 = sphi %s1883_s23, %s25_s23   ;;  %s1830_s22 = sphi %s1881_s22, %s2350_s22   ;;  %s1826_s21 = sphi %s1879_s21, %s2349_s21   ;;  %s1822_s20 = sphi %s1877_s20, %s2348_s20   ;;  %s1818_s19 = sphi %s1875_s19, %s2347_s19   ;;  %s1814_s18 = sphi %s1873_s18, %s2346_s18  }
   0x9   : > { %s37_s26 = sadd.s32 1, %s1830_s22  ;;  %s46_s27 = sadd.s32 1, %s1822_s20 }
   0xa   : > { %p39_p0 = scmp.ge.s32.totalorder %s37_s26, 2  ;;  %p53_p1 = scmp.ne.s32.totalorder %s1822_s20, %s1818_s19 }
   0xb   : > { %p54_p2 = scmp.eq.s32.totalorder %s1834_s23, 0  ;;  %p59_p3 = scmp.ne.s32.totalorder %s1818_s19, %s1814_s18 }
   0xc   : > { %s2352_s26 = smov (%p39_p0, %s37_s26), 0  ;;  %p60_p5 = scmp.eq.s32.totalorder %s1509_s24, 0 }
   0xd   : > { %p1914_p4 = por %p54_p2, %p53_p1  ;;  %s41_s29 = ssub.s32 %s1830_s22, %s2352_s26 }
   0xe   : > { %p148_p6 = scmp.eq.s32.totalorder %s1509_s24, 1  ;;  %p44_p7 = scmp.eq.s32.totalorder %s41_s29, 0 }
   0xf   : > { %p1920_p8 = por %p60_p5, %p59_p3  ;;  %p154_p10 = scmp.eq.s32.totalorder %s1510_s25, 1 }
  0x10   : > { %p1924_p9 = por %p148_p6, %p53_p1  ;;  %p1634_p13 = scmp.lt.s32.totalorder %s1834_s23, 2 }
  0x11   : > { %s1929_s7 = scalar_select %p44_p7, %s1822_s20, %s46_s27  }
  0x12   : > { %s2338_s6 = scalar_select %p1924_p9, 1, 0 }
  0x13   : > { %p1931_p11 = por %p154_p10, %p59_p3  ;;  %s211_s9 = sand.u32 1, %s1822_s20  }
  0x14   : > { %s1513_s10 = sshll.u32 %s211_s9, 6  ;;  %s1594_s11 = sshll.u32 %s1830_s22, 10 }
  0x15   : > { %s2339_s8 = scalar_select %p1931_p11, 1, 0 }
  0x16   : > { %s1942_s14 = scalar_lea.hbm %s2329_s0, %s1594_s11  ;;  %s215_s15 = scalar_lea.vmem [#allocation2], %s1513_s10 }
  0x17   : > { %s225_s16 = sshll.u32 %s215_s15, 4  ;;  %p1948_p0 = pnand %p1634_p13, %p1914_p4  ;;  %s1944_s16 = int_to_ptr.vmem [resolvable:$true] %s225_s16 }
  0x18   : > { %s212_s24 = scalar_lea.sflag [#allocation3], %s211_s9  ;;  %s1690_s25 = scalar_lea.hbm %s1942_s14, 1024 }
  0x19   : > { %p1691_p3 = scmp.ne.s32.totalorder %s1942_s14, %s1690_s25  ;;  %p1692_p5 = pneg %p1948_p0 }
  0x1a   : > { %s1695_s28 = scalar_lea.hbm %s2329_s0, 2048  ;;  %p1696_p4 = scmp.lt.u32.totalorder %s1942_s14, %s2329_s0 }
  0x1b   : > { %p1693_p6 = pnand %p1692_p5, %p1691_p3  ;;  %p1697_p10 = scmp.lt.u32.totalorder %s1695_s28, %s1690_s25 }
  0x1c   : > { %p1699_p12 = scmp.lt.u32.totalorder %s1690_s25, %s1942_s14 }
  0x1d   : > { %p1694_p7 = pneg %p1693_p6  ;;  %p1698_p13 = por %p1697_p10, %p1696_p4 }
  0x1f   : > { %p1700_p1 = por %p1699_p12, %p1698_p13 }
  0x21   : > { %p1701_p2 = pnand %p1700_p1, %p1694_p7 }
  0x23   : > { %1704 = shalt.err (!%p1701_p2)
}
  0x24   : > { %s1705_s9 = scalar_lea.vmem %s1944_s16, 1024  ;;  %s1836_s12 = smov [#allocation2]  }
  0x25   : > { %p1706_p3 = scmp.ne.s32.totalorder %s1944_s16, %s1705_s9  ;;  %s1710_s13 = sshll.u32 %s1836_s12, 4  ;;  %s1711_s13 = int_to_ptr.vmem [resolvable:$false] %s1710_s13 }
  0x26   : > { %s1712_s15 = scalar_lea.vmem %s1711_s13, 2048  ;;  %p1713_p9 = scmp.lt.s32.totalorder %s1944_s16, %s1711_s13 }
  0x27   : > { %p1708_p6 = pnand %p1706_p3, %p1692_p5  ;;  %p1714_p4 = scmp.lt.s32.totalorder %s1712_s15, %s1705_s9 }
  0x29   : > { %p1709_p11 = pneg %p1708_p6  ;;  %p1715_p10 = por %p1714_p4, %p1713_p9 }
  0x2b   : > { %p1716_p12 = pnand %p1715_p10, %p1709_p11 }
  0x2d   : > { %1719 = shalt.err (!%p1716_p12)
}
  0x2e   : > { %1626 = dma.hbm_to_vmem [thread:$0]  (!%p1948_p0), %s1942_s14, 1024, %s1944_s16, %s212_s24  }
  0x2f   : > { %p2341_p1 = scmp.lt.s32.totalorder %s1834_s23, 3  ;;  %p2342_p2 = scmp.ge.s32.totalorder %s1834_s23, 1 }
  0x31   : > { %p231_p5 = pnand %p2342_p2, %p2341_p1 }
  0x32   : > { %s1984_s25 = sand.u32 (!%p231_p5), 1, %s1818_s19  }
  0x33   : > { %234 = sbr.rel (%p231_p5) target bundleno = 614 (0x266), region = 36  ;;  %s1517_s27 = sshll.u32 (!%p231_p5), %s1984_s25, 6 }
  0x34   : > { %s237_s29 = scalar_lea.sflag (!%p231_p5), [#allocation3], %s1984_s25  ;;  %s240_s28 = scalar_lea.vmem (!%p231_p5), [#allocation2], %s1517_s27 }
  0x3a   : > { %1801 = dma.done.wait (%p1920_p8), %s237_s29, 1024  }
  0x3b   : > { %1803 = vsyncadd (%p1920_p8), %s237_s29, 4294966272  ;;  %v1837_v0 = vmov 0.0   ;;  %v285_v1 = vld [vmem:[%s240_s28 + $0x8] sm:$0xff]  ;;  %v287_v2 = vld [vmem:[%s240_s28 + $0x18] sm:$0xff]  ;;  %vm292_vm0 = vcmask 64512   ;;  %v1838_v17 = vmov 0  }
  0x3c   : > { %381 = vmatprep.mubr.f32.mxu0 %v1837_v0  ;;  %494 = vmatprep.mubr.f32.mxu1 %v1837_v0  ;;  %v284_v3 = vld [vmem:[%s240_s28] sm:$0xff]  ;;  %v286_v4 = vld [vmem:[%s240_s28 + $0x10] sm:$0xff]  ;;  %v289_v6 = vld [vmem:[%s240_s28 + $0x28] sm:$0xff]  ;;  %vm802_vm1 = vcmask 523264   ;;  %s1518_s12 = sshll.u32 %s1984_s25, 5  ;;  %s1615_s15 = sshll.u32 %s1826_s21, 9 }
  0x3d   : > { %317 = vmatprep.subr.mxu0 %v285_v1  ;;  %430 = vmatprep.subr.mxu1 %v287_v2  ;;  %v276_v5 = vld [vmem:[%s2330_s1] sm:$0xff]  ;;  %v291_v7 = vld [vmem:[%s240_s28 + $0x38] sm:$0xff]  ;;  %v290_v9 = vld [vmem:[%s240_s28 + $0x30] sm:$0xff]  ;;  %s264_s13 = scalar_lea.vmem [#allocation5], %s1518_s12  ;;  %s2228_s14 = scalar_lea.hbm %s2333_s4, %s1615_s15 }
  0x3e   : > { %318 = vmatpush1.msra.mxu0 %v284_v3  ;;  %431 = vmatpush1.msra.mxu1 %v286_v4  ;;  %v288_v8 = vld [vmem:[%s240_s28 + $0x20] sm:$0xff]  ;;  %v277_v10 = vld [vmem:[%s2330_s1 + $0x8] sm:$0xff]  ;;  %v278_v11 = vld [vmem:[%s2330_s1 + $0x10] sm:$0xff]  ;;  %s1372_s27 = sshll.u32 %s264_s13, 4  ;;  %s1351_s16 = scalar_lea.sflag [#allocation4], %s1984_s25  ;;  %s2230_s27 = int_to_ptr.vmem [resolvable:$true] %s1372_s27 }
  0x3f   : > { %1520 = vmatmul.mubr.msk.f32.vlgmr.msra.gmra.mrb[0].mxu0 %vm292_vm0, %v276_v5  ;;  %1528 = vmatmul.mubr.msk.f32.vlgmr.msra.gmra.mrb[0].mxu1 %vm292_vm0, %v276_v5  ;;  %v279_v12 = vld [vmem:[%s2330_s1 + $0x18] sm:$0xff]  ;;  %v280_v13 = vld [vmem:[%s2330_s1 + $0x20] sm:$0xff]  ;;  %v281_v14 = vld [vmem:[%s2330_s1 + $0x28] sm:$0xff]  ;;  %s1720_s30 = scalar_lea.vmem %s2230_s27, 512  ;;  %p2343_p9 = scmp.ne.s32.totalorder %s2338_s6, 0 }
  0x40   : > { %543 = vmatprep.subr.mxu0 %v289_v6  ;;  %656 = vmatprep.subr.mxu1 %v291_v7  ;;  %v282_v15 = vld [vmem:[%s2330_s1 + $0x30] sm:$0xff]  ;;  %v283_v16 = vld [vmem:[%s2330_s1 + $0x38] sm:$0xff]  ;;  %v2133_v6 = vld [vmem:[%s2331_s2] sm:$0xf]  ;;  %p1721_p8 = scmp.ne.s32.totalorder %s2230_s27, %s1720_s30  ;;  %s1839_s17 = smov [#allocation5]  }
  0x41   : > { %544 = vmatpush1.msra.mxu0 %v288_v8  ;;  %657 = vmatpush1.msra.mxu1 %v290_v9  ;;  %s1724_s24 = sshll.u32 %s1839_s17, 4  ;;  %s1725_s24 = int_to_ptr.vmem [resolvable:$false] %s1724_s24 }
  0x42   : > { %387 = vmatprep.mubr.f32.mxu0 %v1837_v0  ;;  %500 = vmatprep.mubr.f32.mxu1 %v1837_v0  ;;  %p1722_p11 = pnand %p1721_p8, %p2343_p9  ;;  %s1726_s10 = scalar_lea.vmem %s1725_s24, 1024 }
  0x43   : > { %1521 = vmatmul.mubr.msk.f32.gmra.mrb[2].mxu0 %vm292_vm0, %v277_v10  ;;  %1529 = vmatmul.mubr.msk.f32.gmra.mrb[2].mxu1 %vm292_vm0, %v277_v10  ;;  %p1727_p7 = scmp.lt.s32.totalorder %s2230_s27, %s1725_s24  ;;  %p1728_p13 = scmp.lt.s32.totalorder %s1726_s10, %s1720_s30 }
  0x44   : > { %393 = vmatprep.mubr.f32.mxu0 %v1837_v0  ;;  %506 = vmatprep.mubr.f32.mxu1 %v1837_v0  ;;  %p1723_p0 = pneg %p1722_p11 }
  0x45   : > { %p1729_p3 = por %p1728_p13, %p1727_p7 }
  0x47   : > { %1522 = vmatmul.mubr.msk.f32.gmra.mrb[4].mxu0 %vm292_vm0, %v278_v11  ;;  %1530 = vmatmul.mubr.msk.f32.gmra.mrb[4].mxu1 %vm292_vm0, %v278_v11  ;;  %p1730_p6 = pnand %p1729_p3, %p1723_p0 }
  0x48   : > { %399 = vmatprep.mubr.f32.mxu0 %v1837_v0  ;;  %512 = vmatprep.mubr.f32.mxu1 %v1837_v0 }
  0x4b   : > { %1523 = vmatmul.mubr.msk.f32.gmra.mrb[6].mxu0 %vm292_vm0, %v279_v12  ;;  %1531 = vmatmul.mubr.msk.f32.gmra.mrb[6].mxu1 %vm292_vm0, %v279_v12 }
  0x4c   : > { %405 = vmatprep.mubr.f32.mxu0 %v1837_v0  ;;  %518 = vmatprep.mubr.f32.mxu1 %v1837_v0 }
  0x4f   : > { %1524 = vmatmul.mubr.msk.f32.gmra.mrb[8].mxu0 %vm292_vm0, %v280_v13  ;;  %1532 = vmatmul.mubr.msk.f32.gmra.mrb[8].mxu1 %vm292_vm0, %v280_v13 }
  0x50   : > { %411 = vmatprep.mubr.f32.mxu0 %v1837_v0  ;;  %524 = vmatprep.mubr.f32.mxu1 %v1837_v0 }
  0x53   : > { %1525 = vmatmul.mubr.msk.f32.gmra.mrb[10].mxu0 %vm292_vm0, %v281_v14  ;;  %1533 = vmatmul.mubr.msk.f32.gmra.mrb[10].mxu1 %vm292_vm0, %v281_v14 }
  0x54   : > { %417 = vmatprep.mubr.f32.mxu0 %v1837_v0  ;;  %530 = vmatprep.mubr.f32.mxu1 %v1837_v0 }
  0x57   : > { %1526 = vmatmul.mubr.msk.f32.gmra.mrb[12].mxu0 %vm292_vm0, %v282_v15  ;;  %1534 = vmatmul.mubr.msk.f32.gmra.mrb[12].mxu1 %vm292_vm0, %v282_v15 }
  0x58   : > { %423 = vmatprep.mubr.f32.mxu0 %v1837_v0  ;;  %536 = vmatprep.mubr.f32.mxu1 %v1837_v0 }
  0x5b   : > { %1527 = vmatmul.mubr.msk.f32.gmra.mrb[14].mxu0 %vm292_vm0, %v283_v16  ;;  %1535 = vmatmul.mubr.msk.f32.gmra.mrb[14].mxu1 %vm292_vm0, %v283_v16 }
  0x5c   : > { %607 = vmatprep.mubr.f32.mxu0 %v1837_v0  ;;  %720 = vmatprep.mubr.f32.mxu1 %v1837_v0 }
  0x5f   : > { %1536 = vmatmul.mubr.msk.f32.vlgmr.msra.gmra.mrb[16].mxu0 %vm292_vm0, %v276_v5  ;;  %1544 = vmatmul.mubr.msk.f32.vlgmr.msra.gmra.mrb[16].mxu1 %vm292_vm0, %v276_v5 }
  0x60   : > { %613 = vmatprep.mubr.f32.mxu0 %v1837_v0  ;;  %726 = vmatprep.mubr.f32.mxu1 %v1837_v0 }
  0x63   : > { %1537 = vmatmul.mubr.msk.f32.gmra.mrb[18].mxu0 %vm292_vm0, %v277_v10  ;;  %1545 = vmatmul.mubr.msk.f32.gmra.mrb[18].mxu1 %vm292_vm0, %v277_v10 }
  0x64   : > { %619 = vmatprep.mubr.f32.mxu0 %v1837_v0  ;;  %732 = vmatprep.mubr.f32.mxu1 %v1837_v0 }
  0x67   : > { %1538 = vmatmul.mubr.msk.f32.gmra.mrb[20].mxu0 %vm292_vm0, %v278_v11  ;;  %1546 = vmatmul.mubr.msk.f32.gmra.mrb[20].mxu1 %vm292_vm0, %v278_v11 }
  0x68   : > { %625 = vmatprep.mubr.f32.mxu0 %v1837_v0  ;;  %738 = vmatprep.mubr.f32.mxu1 %v1837_v0 }
  0x6b   : > { %1539 = vmatmul.mubr.msk.f32.gmra.mrb[22].mxu0 %vm292_vm0, %v279_v12  ;;  %1547 = vmatmul.mubr.msk.f32.gmra.mrb[22].mxu1 %vm292_vm0, %v279_v12 }
  0x6c   : > { %631 = vmatprep.mubr.f32.mxu0 %v1837_v0  ;;  %744 = vmatprep.mubr.f32.mxu1 %v1837_v0 }
  0x6f   : > { %1540 = vmatmul.mubr.msk.f32.gmra.mrb[24].mxu0 %vm292_vm0, %v280_v13  ;;  %1548 = vmatmul.mubr.msk.f32.gmra.mrb[24].mxu1 %vm292_vm0, %v280_v13 }
  0x70   : > { %637 = vmatprep.mubr.f32.mxu0 %v1837_v0  ;;  %750 = vmatprep.mubr.f32.mxu1 %v1837_v0 }
  0x73   : > { %1541 = vmatmul.mubr.msk.f32.gmra.mrb[26].mxu0 %vm292_vm0, %v281_v14  ;;  %1549 = vmatmul.mubr.msk.f32.gmra.mrb[26].mxu1 %vm292_vm0, %v281_v14 }
  0x74   : > { %643 = vmatprep.mubr.f32.mxu0 %v1837_v0  ;;  %756 = vmatprep.mubr.f32.mxu1 %v1837_v0 }
  0x77   : > { %1542 = vmatmul.mubr.msk.f32.gmra.mrb[28].mxu0 %vm292_vm0, %v282_v15  ;;  %1550 = vmatmul.mubr.msk.f32.gmra.mrb[28].mxu1 %vm292_vm0, %v282_v15 }
  0x78   : > { %649 = vmatprep.mubr.f32.mxu0 %v1837_v0  ;;  %762 = vmatprep.mubr.f32.mxu1 %v1837_v0 }
  0x7b   : > { %1543 = vmatmul.mubr.msk.f32.gmra.mrb[30].mxu0 %vm292_vm0, %v283_v16  ;;  %1551 = vmatmul.mubr.msk.f32.gmra.mrb[30].mxu1 %vm292_vm0, %v283_v16 }
  0x7c   : > { %838 = vmatprep.mubr.bf16.mxu0 %v1838_v17  ;;  %879 = vmatprep.mubr.bf16.mxu1 %v1838_v17 }
 0x112   : > { %v383_v18 = vpop.f32.mrb[0].mxu0  ;;  %v496_v19 = vpop.f32.mrb[0].mxu1 }
 0x113   : > { %v385_v20 = vpop.f32.mrb[1].mxu0  ;;  %v498_v21 = vpop.f32.mrb[1].mxu1 }
 0x116   : > { %v389_v22 = vpop.f32.mrb[2].mxu0  ;;  %v502_v23 = vpop.f32.mrb[2].mxu1 }
 0x117   : > { %v2082_v24 = vpack.c.bf16 %v389_v22, %v383_v18  ;;  %v2084_v25 = vpack.c.bf16 %v502_v23, %v496_v19  ;;  %v391_v26 = vpop.f32.mrb[3].mxu0  ;;  %v504_v27 = vpop.f32.mrb[3].mxu1 }
 0x118   : > { %v2086_v28 = vpack.c.bf16 %v391_v26, %v385_v20  ;;  %v2088_v29 = vpack.c.bf16 %v504_v27, %v498_v21 }
 0x11a   : > { %v395_v30 = vpop.f32.mrb[4].mxu0  ;;  %v508_v31 = vpop.f32.mrb[4].mxu1  ;;  %806 = vmatprep.subr.bf16.mxu0 %v2086_v28  ;;  %847 = vmatprep.subr.bf16.mxu1 %v2088_v29 }
 0x11b   : > { %v397_v32 = vpop.f32.mrb[5].mxu0  ;;  %v510_v33 = vpop.f32.mrb[5].mxu1  ;;  %807 = vmatpush1.bf16.msra.mxu0 %v2082_v24  ;;  %848 = vmatpush1.bf16.msra.mxu1 %v2084_v25 }
 0x11e   : > { %v401_v34 = vpop.f32.mrb[6].mxu0  ;;  %v514_v35 = vpop.f32.mrb[6].mxu1 }
 0x11f   : > { %v2094_v36 = vpack.c.bf16 %v401_v34, %v395_v30  ;;  %v2096_v37 = vpack.c.bf16 %v514_v35, %v508_v31  ;;  %v403_v38 = vpop.f32.mrb[7].mxu0  ;;  %v516_v39 = vpop.f32.mrb[7].mxu1 }
 0x120   : > { %v2098_v40 = vpack.c.bf16 %v403_v38, %v397_v32  ;;  %v2100_v41 = vpack.c.bf16 %v516_v39, %v510_v33 }
 0x122   : > { %v407_v42 = vpop.f32.mrb[8].mxu0  ;;  %v520_v43 = vpop.f32.mrb[8].mxu1  ;;  %808 = vmatprep.subr.bf16.mxu0 %v2098_v40  ;;  %849 = vmatprep.subr.bf16.mxu1 %v2100_v41 }
 0x123   : > { %v409_v44 = vpop.f32.mrb[9].mxu0  ;;  %v522_v45 = vpop.f32.mrb[9].mxu1  ;;  %809 = vmatpush1.bf16.msra.mxu0 %v2094_v36  ;;  %850 = vmatpush1.bf16.msra.mxu1 %v2096_v37 }
 0x126   : > { %v413_v46 = vpop.f32.mrb[10].mxu0  ;;  %v526_v47 = vpop.f32.mrb[10].mxu1 }
 0x127   : > { %v2106_v48 = vpack.c.bf16 %v413_v46, %v407_v42  ;;  %v2108_v49 = vpack.c.bf16 %v526_v47, %v520_v43  ;;  %v415_v50 = vpop.f32.mrb[11].mxu0  ;;  %v528_v51 = vpop.f32.mrb[11].mxu1 }
 0x128   : > { %v2110_v52 = vpack.c.bf16 %v415_v50, %v409_v44  ;;  %v2112_v53 = vpack.c.bf16 %v528_v51, %v522_v45 }
 0x12a   : > { %v419_v54 = vpop.f32.mrb[12].mxu0  ;;  %v532_v55 = vpop.f32.mrb[12].mxu1  ;;  %810 = vmatprep.subr.bf16.mxu0 %v2110_v52  ;;  %851 = vmatprep.subr.bf16.mxu1 %v2112_v53 }
 0x12b   : > { %v421_v56 = vpop.f32.mrb[13].mxu0  ;;  %v534_v57 = vpop.f32.mrb[13].mxu1  ;;  %811 = vmatpush1.bf16.msra.mxu0 %v2106_v48  ;;  %852 = vmatpush1.bf16.msra.mxu1 %v2108_v49 }
 0x12e   : > { %v425_v58 = vpop.f32.mrb[14].mxu0  ;;  %v538_v59 = vpop.f32.mrb[14].mxu1 }
 0x12f   : > { %v2118_v60 = vpack.c.bf16 %v425_v58, %v419_v54  ;;  %v2120_v61 = vpack.c.bf16 %v538_v59, %v532_v55  ;;  %v427_v62 = vpop.f32.mrb[15].mxu0  ;;  %v540_v63 = vpop.f32.mrb[15].mxu1 }
 0x130   : > { %v2122_v0 = vpack.c.bf16 %v427_v62, %v421_v56  ;;  %v2124_v1 = vpack.c.bf16 %v540_v63, %v534_v57 }
 0x132   : > { %v609_v2 = vpop.f32.mrb[16].mxu0  ;;  %v722_v3 = vpop.f32.mrb[16].mxu1  ;;  %812 = vmatprep.subr.bf16.mxu0 %v2122_v0  ;;  %853 = vmatprep.subr.bf16.mxu1 %v2124_v1 }
 0x133   : > { %v611_v4 = vpop.f32.mrb[17].mxu0  ;;  %v724_v5 = vpop.f32.mrb[17].mxu1  ;;  %813 = vmatpush1.bf16.msra.mxu0 %v2118_v60  ;;  %854 = vmatpush1.bf16.msra.mxu1 %v2120_v61 }
 0x136   : > { %v615_v7 = vpop.f32.mrb[18].mxu0  ;;  %v728_v8 = vpop.f32.mrb[18].mxu1  ;;  %1552 = vmatmul.mubr.msk.bf16.vlgmr.msra.gmra.mrb[32].mxu0 %vm802_vm1, %v2133_v6  ;;  %1553 = vmatmul.mubr.msk.bf16.vlgmr.msra.gmra.mrb[32].mxu1 %vm802_vm1, %v2133_v6 }
 0x137   : > { %v2139_v9 = vpack.c.bf16 %v615_v7, %v609_v2  ;;  %v2141_v10 = vpack.c.bf16 %v728_v8, %v722_v3  ;;  %v617_v11 = vpop.f32.mrb[19].mxu0  ;;  %v730_v12 = vpop.f32.mrb[19].mxu1  ;;  %920 = vmatprep.mubr.bf16.mxu0 %v1838_v17  ;;  %961 = vmatprep.mubr.bf16.mxu1 %v1838_v17 }
 0x138   : > { %v2145_v13 = vpack.c.bf16 %v617_v11, %v611_v4  ;;  %v2147_v14 = vpack.c.bf16 %v730_v12, %v724_v5 }
 0x13a   : > { %v621_v15 = vpop.f32.mrb[20].mxu0  ;;  %v734_v16 = vpop.f32.mrb[20].mxu1  ;;  %888 = vmatprep.subr.bf16.mxu0 %v2145_v13  ;;  %929 = vmatprep.subr.bf16.mxu1 %v2147_v14 }
 0x13b   : > { %v623_v18 = vpop.f32.mrb[21].mxu0  ;;  %v736_v19 = vpop.f32.mrb[21].mxu1  ;;  %889 = vmatpush1.bf16.msra.mxu0 %v2139_v9  ;;  %930 = vmatpush1.bf16.msra.mxu1 %v2141_v10 }
 0x13e   : > { %v627_v20 = vpop.f32.mrb[22].mxu0  ;;  %v740_v21 = vpop.f32.mrb[22].mxu1 }
 0x13f   : > { %v2153_v22 = vpack.c.bf16 %v627_v20, %v621_v15  ;;  %v2155_v23 = vpack.c.bf16 %v740_v21, %v734_v16  ;;  %v629_v26 = vpop.f32.mrb[23].mxu0  ;;  %v742_v27 = vpop.f32.mrb[23].mxu1 }
 0x140   : > { %v2157_v30 = vpack.c.bf16 %v629_v26, %v623_v18  ;;  %v2159_v31 = vpack.c.bf16 %v742_v27, %v736_v19 }
 0x142   : > { %v633_v32 = vpop.f32.mrb[24].mxu0  ;;  %v746_v33 = vpop.f32.mrb[24].mxu1  ;;  %890 = vmatprep.subr.bf16.mxu0 %v2157_v30  ;;  %931 = vmatprep.subr.bf16.mxu1 %v2159_v31 }
 0x143   : > { %v635_v34 = vpop.f32.mrb[25].mxu0  ;;  %v748_v35 = vpop.f32.mrb[25].mxu1  ;;  %891 = vmatpush1.bf16.msra.mxu0 %v2153_v22  ;;  %932 = vmatpush1.bf16.msra.mxu1 %v2155_v23 }
 0x146   : > { %v639_v38 = vpop.f32.mrb[26].mxu0  ;;  %v752_v39 = vpop.f32.mrb[26].mxu1 }
 0x147   : > { %v2165_v42 = vpack.c.bf16 %v639_v38, %v633_v32  ;;  %v2167_v43 = vpack.c.bf16 %v752_v39, %v746_v33  ;;  %v641_v44 = vpop.f32.mrb[27].mxu0  ;;  %v754_v45 = vpop.f32.mrb[27].mxu1 }
 0x148   : > { %v790_v46 = vpack.c.bf16 %v641_v44, %v635_v34  ;;  %v792_v47 = vpack.c.bf16 %v754_v45, %v748_v35 }
 0x14a   : > { %v645_v50 = vpop.f32.mrb[28].mxu0  ;;  %v758_v51 = vpop.f32.mrb[28].mxu1  ;;  %892 = vmatprep.subr.bf16.mxu0 %v790_v46  ;;  %933 = vmatprep.subr.bf16.mxu1 %v792_v47 }
 0x14b   : > { %v647_v54 = vpop.f32.mrb[29].mxu0  ;;  %v760_v55 = vpop.f32.mrb[29].mxu1  ;;  %893 = vmatpush1.bf16.msra.mxu0 %v2165_v42  ;;  %934 = vmatpush1.bf16.msra.mxu1 %v2167_v43 }
 0x14e   : > { %v651_v56 = vpop.f32.mrb[30].mxu0  ;;  %v764_v57 = vpop.f32.mrb[30].mxu1 }
 0x14f   : > { %v797_v58 = vpack.c.bf16 %v651_v56, %v645_v50  ;;  %v799_v59 = vpack.c.bf16 %v764_v57, %v758_v51  ;;  %v653_v62 = vpop.f32.mrb[31].mxu0  ;;  %v766_v63 = vpop.f32.mrb[31].mxu1 }
 0x150   : > { %v798_v2 = vpack.c.bf16 %v653_v62, %v647_v54  ;;  %v800_v3 = vpack.c.bf16 %v766_v63, %v760_v55 }
 0x152   : > { %894 = vmatprep.subr.bf16.mxu0 %v798_v2  ;;  %935 = vmatprep.subr.bf16.mxu1 %v800_v3 }
 0x153   : > { %895 = vmatpush1.bf16.msra.mxu0 %v797_v58  ;;  %936 = vmatpush1.bf16.msra.mxu1 %v799_v59 }
 0x154   : > { %1026 = vmatprep.subr.bf16.mxu0 %v2086_v28  ;;  %1079 = vmatprep.subr.bf16.mxu1 %v2088_v29 }
 0x156   : > { %1554 = vmatmul.mubr.msk.bf16.vlgmr.msra.gmra.mrb[36].mxu0 %vm802_vm1, %v2133_v6  ;;  %1555 = vmatmul.mubr.msk.bf16.vlgmr.msra.gmra.mrb[36].mxu1 %vm802_vm1, %v2133_v6 }
 0x157   : > { %1027 = vmatpush1.bf16.msra.mxu0 %v2082_v24  ;;  %1080 = vmatpush1.bf16.msra.mxu1 %v2084_v25  ;;  %v1688_v24 = vld [vmem:[%s2332_s3] sm:$0xff]   ;;  %v1689_v25 = vld [vmem:[%s2332_s3 + $0x8] sm:$0xff]  }
 0x158   : > { %1028 = vmatprep.subr.bf16.mxu0 %v2098_v40  ;;  %1081 = vmatprep.subr.bf16.mxu1 %v2100_v41 }
 0x159   : > { %1058 = vmatprep.mubr.bf16.mxu0 %v1838_v17  ;;  %1111 = vmatprep.mubr.bf16.mxu1 %v1838_v17 }
 0x15b   : > { %1029 = vmatpush1.bf16.msra.mxu0 %v2094_v36  ;;  %1082 = vmatpush1.bf16.msra.mxu1 %v2096_v37 }
 0x15c   : > { %1030 = vmatprep.subr.bf16.mxu0 %v2110_v52  ;;  %1083 = vmatprep.subr.bf16.mxu1 %v2112_v53 }
 0x15f   : > { %1031 = vmatpush1.bf16.msra.mxu0 %v2106_v48  ;;  %1084 = vmatpush1.bf16.msra.mxu1 %v2108_v49 }
 0x160   : > { %1032 = vmatprep.subr.bf16.mxu0 %v2122_v0  ;;  %1085 = vmatprep.subr.bf16.mxu1 %v2124_v1 }
 0x163   : > { %1033 = vmatpush1.bf16.msra.mxu0 %v2118_v60  ;;  %1086 = vmatpush1.bf16.msra.mxu1 %v2120_v61 }
 0x164   : > { %1132 = vmatprep.subr.bf16.mxu0 %v2145_v13  ;;  %1185 = vmatprep.subr.bf16.mxu1 %v2147_v14 }
 0x166   : > { %1562 = vmatmul.mubr.msk.bf16.vlgmr.msra.gmra.mrb[40].mxu0 %vm802_vm1, %v1688_v24  ;;  %1564 = vmatmul.mubr.msk.bf16.vlgmr.msra.gmra.mrb[40].mxu1 %vm802_vm1, %v1688_v24 }
 0x167   : > { %1133 = vmatpush1.bf16.msra.mxu0 %v2139_v9  ;;  %1186 = vmatpush1.bf16.msra.mxu1 %v2141_v10 }
 0x168   : > { %1134 = vmatprep.subr.bf16.mxu0 %v2157_v30  ;;  %1187 = vmatprep.subr.bf16.mxu1 %v2159_v31 }
 0x169   : > { %1068 = vmatprep.mubr.bf16.mxu0 %v1838_v17  ;;  %1121 = vmatprep.mubr.bf16.mxu1 %v1838_v17 }
 0x16b   : > { %1135 = vmatpush1.bf16.msra.mxu0 %v2153_v22  ;;  %1188 = vmatpush1.bf16.msra.mxu1 %v2155_v23 }
 0x16c   : > { %1136 = vmatprep.subr.bf16.mxu0 %v790_v46  ;;  %1189 = vmatprep.subr.bf16.mxu1 %v792_v47 }
 0x16e   : > { %1563 = vmatmul.mubr.msk.bf16.gmra.mrb[44].mxu0 %vm802_vm1, %v1689_v25  ;;  %1565 = vmatmul.mubr.msk.bf16.gmra.mrb[44].mxu1 %vm802_vm1, %v1689_v25 }
 0x16f   : > { %1137 = vmatpush1.bf16.msra.mxu0 %v2165_v42  ;;  %1190 = vmatpush1.bf16.msra.mxu1 %v2167_v43 }
 0x170   : > { %1138 = vmatprep.subr.bf16.mxu0 %v798_v2  ;;  %1191 = vmatprep.subr.bf16.mxu1 %v800_v3 }
 0x171   : > { %1164 = vmatprep.mubr.bf16.mxu0 %v1838_v17  ;;  %1217 = vmatprep.mubr.bf16.mxu1 %v1838_v17 }
 0x173   : > { %1139 = vmatpush1.bf16.msra.mxu0 %v797_v58  ;;  %1192 = vmatpush1.bf16.msra.mxu1 %v799_v59 }
 0x176   : > { %1566 = vmatmul.mubr.msk.bf16.vlgmr.msra.gmra.mrb[48].mxu0 %vm802_vm1, %v1688_v24  ;;  %1568 = vmatmul.mubr.msk.bf16.vlgmr.msra.gmra.mrb[48].mxu1 %vm802_vm1, %v1688_v24 }
 0x177   : > { %1174 = vmatprep.mubr.bf16.mxu0 %v1838_v17  ;;  %1227 = vmatprep.mubr.bf16.mxu1 %v1838_v17 }
 0x17e   : > { %1567 = vmatmul.mubr.msk.bf16.gmra.mrb[52].mxu0 %vm802_vm1, %v1689_v25  ;;  %1569 = vmatmul.mubr.msk.bf16.gmra.mrb[52].mxu1 %vm802_vm1, %v1689_v25 }
 0x209   : > { %v840_v28 = vpop.f32.mrb[32].mxu0  ;;  %v881_v29 = vpop.f32.mrb[32].mxu1 }
 0x20a   : > { %v842_v36 = vpop.f32.mrb[33].mxu0  ;;  %v883_v37 = vpop.f32.mrb[33].mxu1 }
 0x20b   : > { %v1595_v40 = vpack.c.bf16 %v842_v36, %v840_v28  ;;  %v1596_v41 = vpack.c.bf16 %v883_v37, %v881_v29  ;;  %v844_v48 = vpop.f32.mrb[34].mxu0  ;;  %v885_v49 = vpop.f32.mrb[34].mxu1 }
 0x20c   : > { %v845_v52 = vpop.f32.mrb[35].mxu0  ;;  %v886_v53 = vpop.f32.mrb[35].mxu1 }
 0x20d   : > { %1002 = vst [vmem:[%s264_s13] sm:$0xff] %v1595_v40  ;;  %1003 = vst [vmem:[%s264_s13 + $0x8] sm:$0xff] %v1596_v41 }
 0x229   : > { %v922_v17 = vpop.f32.mrb[36].mxu0  ;;  %v963_v60 = vpop.f32.mrb[36].mxu1 }
 0x22a   : > { %v924_v61 = vpop.f32.mrb[37].mxu0  ;;  %v965_v0 = vpop.f32.mrb[37].mxu1 }
 0x22b   : > { %v1597_v1 = vpack.c.bf16 %v924_v61, %v922_v17  ;;  %v1598_v4 = vpack.c.bf16 %v965_v0, %v963_v60  ;;  %v926_v5 = vpop.f32.mrb[38].mxu0  ;;  %v967_v6 = vpop.f32.mrb[38].mxu1 }
 0x22c   : > { %v927_v7 = vpop.f32.mrb[39].mxu0  ;;  %v968_v8 = vpop.f32.mrb[39].mxu1 }
 0x22d   : > { %1004 = vst [vmem:[%s264_s13 + $0x10] sm:$0xff] %v1597_v1  ;;  %1005 = vst [vmem:[%s264_s13 + $0x18] sm:$0xff] %v1598_v4 }
 0x22e   : > { %1733 = shalt.err (!%p1730_p6)
}
 0x22f   : > { %s1734_s11 = scalar_lea.hbm %s2228_s14, 512  ;;  %s1738_s13 = scalar_lea.hbm %s2333_s4, 1024 }
 0x230   : > { %p1735_p4 = scmp.ne.s32.totalorder %s2228_s14, %s1734_s11  ;;  %p1739_p1 = scmp.lt.u32.totalorder %s2228_s14, %s2333_s4 }
 0x231   : > { %p1740_p2 = scmp.lt.u32.totalorder %s1738_s13, %s1734_s11  ;;  %p1742_p8 = scmp.lt.u32.totalorder %s1734_s11, %s2228_s14 }
 0x232   : > { %p1736_p10 = pnand %p1735_p4, %p2343_p9 }
 0x233   : > { %p1741_p5 = por %p1740_p2, %p1739_p1 }
 0x234   : > { %p1737_p12 = pneg %p1736_p10 }
 0x235   : > { %p1743_p11 = por %p1742_p8, %p1741_p5 }
 0x237   : > { %p1744_p0 = pnand %p1743_p11, %p1737_p12 }
 0x239   : > { %1747 = shalt.err (!%p1744_p0)
}
 0x23a   : > { %1619 = dma.vmem_to_hbm [thread:$0]  (%p2343_p9), %s2230_s27, 512, %s2228_s14, %s1351_s16   ;;  %v1060_v9 = vpop.f32.mrb[40].mxu0  ;;  %v1113_v10 = vpop.f32.mrb[40].mxu1 }
 0x23b   : > { %s1519_s28 = sshll.u32 %s1984_s25, 7  ;;  %v1062_v11 = vpop.f32.mrb[41].mxu0  ;;  %v1115_v12 = vpop.f32.mrb[41].mxu1  ;;  %s1616_s27 = sshll.u32 %s1826_s21, 11 }
 0x23c   : > { %v1599_v13 = vpack.c.bf16 %v1062_v11, %v1060_v9  ;;  %v1600_v14 = vpack.c.bf16 %v1115_v12, %v1113_v10  ;;  %v1064_v15 = vpop.f32.mrb[42].mxu0  ;;  %v1117_v16 = vpop.f32.mrb[42].mxu1  ;;  %s2255_s30 = scalar_lea.vmem [#allocation6], %s1519_s28  ;;  %s2274_s24 = scalar_lea.hbm %s2334_s5, %s1616_s27 }
 0x23d   : > { %v1066_v18 = vpop.f32.mrb[43].mxu0  ;;  %v1119_v19 = vpop.f32.mrb[43].mxu1  ;;  %s1387_s14 = sshll.u32 %s2255_s30, 4  ;;  %s1356_s21 = scalar_lea.sflag [#allocation7], %s1984_s25  ;;  %s2276_s14 = int_to_ptr.vmem [resolvable:$true] %s1387_s14 }
 0x23e   : > { %1334 = vst [vmem:[%s2255_s30] sm:$0xff] %v1599_v13  ;;  %1335 = vst [vmem:[%s2255_s30 + $0x8] sm:$0xff] %v1600_v14  ;;  %v1603_v20 = vpack.c.bf16 %v1066_v18, %v1064_v15  ;;  %v1604_v21 = vpack.c.bf16 %v1119_v19, %v1117_v16  ;;  %s1748_s10 = scalar_lea.vmem %s2276_s14, 2048  ;;  %s1840_s11 = smov [#allocation6]  }
 0x23f   : > { %p1749_p7 = scmp.ne.s32.totalorder %s2276_s14, %s1748_s10  ;;  %s1752_s9 = sshll.u32 %s1840_s11, 4  ;;  %s1753_s9 = int_to_ptr.vmem [resolvable:$false] %s1752_s9 }
 0x240   : > { %1338 = vst [vmem:[%s2255_s30 + $0x20] sm:$0xff] %v1603_v20  ;;  %1339 = vst [vmem:[%s2255_s30 + $0x28] sm:$0xff] %v1604_v21  ;;  %s1754_s12 = scalar_lea.vmem %s1753_s9, 4096  ;;  %p1755_p6 = scmp.lt.s32.totalorder %s2276_s14, %s1753_s9 }
 0x241   : > { %v1070_v22 = vpop.f32.mrb[44].mxu0  ;;  %v1123_v23 = vpop.f32.mrb[44].mxu1  ;;  %p1750_p13 = pnand %p1749_p7, %p2343_p9  ;;  %p1756_p4 = scmp.lt.s32.totalorder %s1754_s12, %s1748_s10 }
 0x242   : > { %v1072_v26 = vpop.f32.mrb[45].mxu0  ;;  %v1125_v27 = vpop.f32.mrb[45].mxu1 }
 0x243   : > { %v1607_v30 = vpack.c.bf16 %v1072_v26, %v1070_v22  ;;  %v1608_v31 = vpack.c.bf16 %v1125_v27, %v1123_v23  ;;  %v1074_v32 = vpop.f32.mrb[46].mxu0  ;;  %v1127_v33 = vpop.f32.mrb[46].mxu1  ;;  %p1751_p3 = pneg %p1750_p13  ;;  %p1757_p10 = por %p1756_p4, %p1755_p6 }
 0x244   : > { %v1076_v34 = vpop.f32.mrb[47].mxu0  ;;  %v1129_v35 = vpop.f32.mrb[47].mxu1 }
 0x245   : > { %1342 = vst [vmem:[%s2255_s30 + $0x40] sm:$0xff] %v1607_v30  ;;  %1343 = vst [vmem:[%s2255_s30 + $0x48] sm:$0xff] %v1608_v31  ;;  %v1611_v38 = vpack.c.bf16 %v1076_v34, %v1074_v32  ;;  %v1612_v39 = vpack.c.bf16 %v1129_v35, %v1127_v33  ;;  %p1758_p12 = pnand %p1757_p10, %p1751_p3 }
 0x247   : > { %1346 = vst [vmem:[%s2255_s30 + $0x60] sm:$0xff] %v1611_v38  ;;  %1347 = vst [vmem:[%s2255_s30 + $0x68] sm:$0xff] %v1612_v39 }
 0x249   : > { %v1166_v42 = vpop.f32.mrb[48].mxu0  ;;  %v1219_v43 = vpop.f32.mrb[48].mxu1 }
 0x24a   : > { %v1168_v44 = vpop.f32.mrb[49].mxu0  ;;  %v1221_v45 = vpop.f32.mrb[49].mxu1 }
 0x24b   : > { %v1601_v46 = vpack.c.bf16 %v1168_v44, %v1166_v42  ;;  %v1602_v47 = vpack.c.bf16 %v1221_v45, %v1219_v43  ;;  %v1170_v50 = vpop.f32.mrb[50].mxu0  ;;  %v1223_v51 = vpop.f32.mrb[50].mxu1 }
 0x24c   : > { %v1172_v54 = vpop.f32.mrb[51].mxu0  ;;  %v1225_v55 = vpop.f32.mrb[51].mxu1 }
 0x24d   : > { %1336 = vst [vmem:[%s2255_s30 + $0x10] sm:$0xff] %v1601_v46  ;;  %1337 = vst [vmem:[%s2255_s30 + $0x18] sm:$0xff] %v1602_v47  ;;  %v1605_v56 = vpack.c.bf16 %v1172_v54, %v1170_v50  ;;  %v1606_v57 = vpack.c.bf16 %v1225_v55, %v1223_v51 }
 0x24f   : > { %1340 = vst [vmem:[%s2255_s30 + $0x30] sm:$0xff] %v1605_v56  ;;  %1341 = vst [vmem:[%s2255_s30 + $0x38] sm:$0xff] %v1606_v57 }
 0x251   : > { %v1176_v58 = vpop.f32.mrb[52].mxu0  ;;  %v1229_v59 = vpop.f32.mrb[52].mxu1 }
 0x252   : > { %v1178_v62 = vpop.f32.mrb[53].mxu0  ;;  %v1231_v63 = vpop.f32.mrb[53].mxu1 }
 0x253   : > { %v1609_v2 = vpack.c.bf16 %v1178_v62, %v1176_v58  ;;  %v1610_v3 = vpack.c.bf16 %v1231_v63, %v1229_v59  ;;  %v1180_v24 = vpop.f32.mrb[54].mxu0  ;;  %v1233_v25 = vpop.f32.mrb[54].mxu1 }
 0x254   : > { %v1182_v28 = vpop.f32.mrb[55].mxu0  ;;  %v1235_v29 = vpop.f32.mrb[55].mxu1 }
 0x255   : > { %1344 = vst [vmem:[%s2255_s30 + $0x50] sm:$0xff] %v1609_v2  ;;  %1345 = vst [vmem:[%s2255_s30 + $0x58] sm:$0xff] %v1610_v3  ;;  %v1613_v36 = vpack.c.bf16 %v1182_v28, %v1180_v24  ;;  %v1614_v37 = vpack.c.bf16 %v1235_v29, %v1233_v25 }
 0x257   : > { %1348 = vst [vmem:[%s2255_s30 + $0x70] sm:$0xff] %v1613_v36  ;;  %1349 = vst [vmem:[%s2255_s30 + $0x78] sm:$0xff] %v1614_v37 }
 0x258   : > { %1761 = shalt.err (!%p1758_p12)
}
 0x259   : > { %s1762_s13 = scalar_lea.hbm %s2274_s24, 2048  ;;  %s1766_s28 = scalar_lea.hbm %s2334_s5, 4096 }
 0x25a   : > { %p1763_p1 = scmp.ne.s32.totalorder %s2274_s24, %s1762_s13  ;;  %p1767_p8 = scmp.lt.u32.totalorder %s2274_s24, %s2334_s5 }
 0x25b   : > { %p1768_p11 = scmp.lt.u32.totalorder %s1766_s28, %s1762_s13  ;;  %p1770_p7 = scmp.lt.u32.totalorder %s1762_s13, %s2274_s24 }
 0x25c   : > { %p1764_p2 = pnand %p1763_p1, %p2343_p9 }
 0x25d   : > { %p1769_p0 = por %p1768_p11, %p1767_p8 }
 0x25e   : > { %p1765_p5 = pneg %p1764_p2 }
 0x25f   : > { %p1771_p13 = por %p1770_p7, %p1769_p0 }
 0x261   : > { %p1772_p3 = pnand %p1771_p13, %p1765_p5 }
 0x263   : > { %1775 = shalt.err (!%p1772_p3)
}
 0x264   : > { %s1841_s16 = smov 512   ;;  %s1842_s17 = smov 32  }
 0x265   : > { %1620 = dma.vmem_to_hbm [thread:$0]  (%p2343_p9), %s2276_s14, 2048, %s2274_s24, %s1356_s21, %s1841_s16, %s1841_s16, %s1842_s17  }
 0x266 PF: > { %s1402_s10 = sand.u32 1, %s1814_s18   ;;  %p2344_p6 = scmp.ne.s32.totalorder %s2339_s8, 0 }
 0x267   : > { %p2345_p4 = scmp.ge.s32.totalorder %s1834_s23, 2  ;;  %s1403_s11 = scalar_lea.sflag [#allocation4], %s1402_s10 }
 0x269   : > { %p1628_p10 = pnand %p2345_p4, %p2344_p6 }
 0x26b   : > { %1805 = dma.done.wait (!%p1628_p10), %s1403_s11, 512  }
 0x26c   : > { %1807 = vsyncadd (!%p1628_p10), %s1403_s11, 4294966784  ;;  %s1412_s9 = scalar_lea.sflag [#allocation7], %s1402_s10 }
 0x26d   : > { %1809 = dma.done.wait (!%p1628_p10), %s1412_s9, 2048  }
 0x26e   : > { %1811 = vsyncadd (!%p1628_p10), %s1412_s9, 4294965248  ;;  %s25_s23 = sadd.s32 1, %s1834_s23   ;;  %s2346_s18 = smov %s1818_s19 }
 0x26f   : > { %p22_p12 = scmp.ge.s32.totalorder %s25_s23, 4   ;;  %s2347_s19 = smov %s1822_s20 }
 0x270   : > { %s2348_s20 = smov %s1929_s7  ;;  %s2349_s21 = smov %s1830_s22 }
 0x271   : > { %s2350_s22 = smov %s2352_s26  ;;  %24 = sbr.rel (!%p22_p12) target bundleno = 8 (0x8), region = 98 }
 0x278   :  { %1417 = vsyncpa [#allocation3], 1 }
 0x279   :  { %1419 = vsyncpa [#allocation3 + $0x1], 1 }
 0x27a   :  { %1420 = vsyncpa [#allocation4], 1 }
 0x27b   :  { %1422 = vsyncpa [#allocation4 + $0x1], 1 }
 0x27c   :  { %1423 = vsyncpa [#allocation7], 1 }
 0x27d   :  { %1425 = vsyncpa [#allocation7 + $0x1], 1 }

</bundles_post_ra>
